<compile_context>
chip_gen: v7x
topology: tpu7x:2x2x1
jax: 0.10.0
libtpu: 0.0.40
codegen_flags: <defaults>
</compile_context>

<pallas_src>
import functools

import jax
import jax.numpy as jnp
from jax.experimental import pallas as pl
from jax.experimental.pallas import tpu as pltpu


def _round_up(n, m):
    return ((n + m - 1) // m) * m


INPUT_SIZE = 11
HIDDEN_SIZE = 110
HIDDEN_PADDED = 128                                   # 110 zero-padded to 128
VECTOR_SIZE = 6
NUM_HEADS = 3                                         # [y_pred, y_det, y_ctx]
WX_ROWS = _round_up(HIDDEN_PADDED + NUM_HEADS, 8)     # 136: fused fc1 | heads-x rows
NEG_SLOPE = 0.01                                      # nn.LeakyReLU default


# ---------------------------------------------------------------------------
# Kernel (feature-major / transposed layout)
# ---------------------------------------------------------------------------
def _mlp_kernel(
    xt_ref,        # [INPUT_SIZE, TB]            f32 (cast in-kernel)
    wx_ref,        # [WX_ROWS, INPUT_SIZE]       compute dtype (rows 0:128 = w1^T, 128:131 = heads-x^T)
    b1_ref,        # [HIDDEN_PADDED, 1]          f32
    w2_ref,        # [HIDDEN_PADDED, HIDDEN_PADDED]  compute dtype (w2^T)
    b2_ref,        # [HIDDEN_PADDED, 1]          f32
    whc_ref,       # [NUM_HEADS, HIDDEN_PADDED]  compute dtype ((wc @ Wh_ctx)^T)
    bh_ref,        # [NUM_HEADS, 1]              f32
    out_ref,       # [NUM_HEADS, TB]             f32 (lane-dense store)
):
    # x^T tile arrives as f32 from HBM; cast to compute dtype on the VPU (free slot).
    x = xt_ref[...].astype(wx_ref.dtype)

    # Fused fc1 + heads-x matmul: [136, 11] @ [11, TB] -> [136, TB], f32 accumulation.
    hx = jnp.dot(wx_ref[...], x, preferred_element_type=jnp.float32)

    # fc1 + LeakyReLU
    h1 = hx[0:HIDDEN_PADDED, :] + b1_ref[...]
    r1 = jnp.where(h1 > 0, h1, NEG_SLOPE * h1)

    # fc2 + LeakyReLU: [128, 128] @ [128, TB]
    h2 = jnp.dot(w2_ref[...], r1.astype(w2_ref.dtype),
                 preferred_element_type=jnp.float32) + b2_ref[...]
    r2 = jnp.where(h2 > 0, h2, NEG_SLOPE * h2)

    # Folded context + three heads: [3, 128] @ [128, TB] + heads' x-term + bias.
    heads = (jnp.dot(whc_ref[...], r2.astype(whc_ref.dtype),
                     preferred_element_type=jnp.float32)
             + hx[HIDDEN_PADDED:HIDDEN_PADDED + NUM_HEADS, :]
             + bh_ref[...])
    out_ref[...] = jax.nn.sigmoid(heads)


# ---------------------------------------------------------------------------
# One-time host-side weight preparation (call at model load, NOT per forward)
# ---------------------------------------------------------------------------
def prepare_kernel_params(params, compute_dtype=jnp.bfloat16):
    f32 = jnp.float32
    w1, b1 = params["w1"].astype(f32), params["b1"].astype(f32)   # [I,H], [1,H]
    w2, b2 = params["w2"].astype(f32), params["b2"].astype(f32)   # [H,H], [1,H]
    wc, bc = params["wc"].astype(f32), params["bc"].astype(f32)   # [H,V], [1,V]

    # Columns = (prediction, detection, context) heads acting on the context vector.
    w_head_ctx = jnp.concatenate(
        [params["wp_ctx"], params["wd_ctx"], params["wlc"]], axis=1).astype(f32)   # [V, 3]
    # Columns acting on raw x (LR_context sees no x -> zero column).
    w_head_x = jnp.concatenate(
        [params["wp_x"], params["wd_x"], jnp.zeros((INPUT_SIZE, 1), f32)],
        axis=1).astype(f32)                                                         # [I, 3]
    # Context bias flows through the head weights (context Linear folded away).
    b_head = (bc @ w_head_ctx
              + jnp.concatenate([params["bp"], params["bd"], params["blc"]],
                                axis=1).astype(f32))                                # [1, 3]
    wc_heads = wc @ w_head_ctx                                                      # [H, 3]

    pad_h = HIDDEN_PADDED - HIDDEN_SIZE
    # NOTE: padding relies on zero weight/bias padding and LeakyReLU(0) == 0.

    w1_t = jnp.pad(w1.T, ((0, pad_h), (0, 0)))                     # [128, I]
    wx = jnp.concatenate(
        [w1_t, w_head_x.T,
         jnp.zeros((WX_ROWS - HIDDEN_PADDED - NUM_HEADS, INPUT_SIZE), f32)],
        axis=0)                                                     # [136, I]
    w2_t = jnp.pad(w2.T, ((0, pad_h), (0, pad_h)))                  # [128, 128]
    whc_t = jnp.pad(wc_heads.T, ((0, 0), (0, pad_h)))               # [3, 128]

    return {
        "wx": wx.astype(compute_dtype),
        "b1": jnp.pad(b1, ((0, 0), (0, pad_h))).T,                  # [128, 1] f32
        "w2": w2_t.astype(compute_dtype),
        "b2": jnp.pad(b2, ((0, 0), (0, pad_h))).T,                  # [128, 1] f32
        "whc": whc_t.astype(compute_dtype),
        "bh": b_head.T,                                             # [3, 1] f32
    }


# ---------------------------------------------------------------------------
# Forward wrapper
# ---------------------------------------------------------------------------
@functools.partial(jax.jit, static_argnames=("tb",))
def mlp_lr_context_forward(x, kernel_params, *, tb=4096):
    """x: [B, INPUT_SIZE] f32; kernel_params from prepare_kernel_params().
    Returns (y_prediction, y_detection, y_context_prediction), each [B, 1] f32."""
    kp = kernel_params
    B = x.shape[0]

    # Batch tile along the lane dim: multiple of 128, capped at `tb`, and chosen
    # so the grid has >=2 steps when possible (keeps both v7x TensorCores busy).
    Bp0 = _round_up(B, 128)
    TB = max(128, min(tb, _round_up(pl.cdiv(Bp0, 2), 128)))
    Bp = _round_up(B, TB)

    # Single wrapper pass over x: transpose to feature-major (+ pad ragged tail).
    # x stays f32; the kernel casts to the compute dtype in VMEM.
    x_t = x.T                                                      # [I, B]
    if Bp != B:
        x_t = jnp.pad(x_t, ((0, 0), (0, Bp - B)))

    out_t = pl.pallas_call(
        _mlp_kernel,
        out_shape=jax.ShapeDtypeStruct((NUM_HEADS, Bp), jnp.float32),
        grid=(Bp // TB,),
        in_specs=[
            pl.BlockSpec((INPUT_SIZE, TB), lambda i: (0, i)),          # x^T: batch-tiled along lanes
            pl.BlockSpec((WX_ROWS, INPUT_SIZE), lambda i: (0, 0)),     # fused fc1 | heads-x weights
            pl.BlockSpec((HIDDEN_PADDED, 1), lambda i: (0, 0)),
            pl.BlockSpec((HIDDEN_PADDED, HIDDEN_PADDED), lambda i: (0, 0)),
            pl.BlockSpec((HIDDEN_PADDED, 1), lambda i: (0, 0)),
            pl.BlockSpec((NUM_HEADS, HIDDEN_PADDED), lambda i: (0, 0)),
            pl.BlockSpec((NUM_HEADS, 1), lambda i: (0, 0)),
        ],
        out_specs=pl.BlockSpec((NUM_HEADS, TB), lambda i: (0, i)),
        compiler_params=pltpu.CompilerParams(
            dimension_semantics=("parallel",),           # batch axis -> megacore on v7x
            vmem_limit_bytes=32 * 1024 * 1024),          # explicit budget (v5e default is 16 MiB)
    )(x_t, kp["wx"], kp["b1"], kp["w2"], kp["b2"], kp["whc"], kp["bh"])

    # Padded batch columns carry sigmoid(bias-only) garbage; sliced off here.
    out = out_t[:, :B]
    return out[0:1, :].T, out[1:2, :].T, out[2:3, :].T


# ---------------------------------------------------------------------------
# Params (PyTorch-Linear-like init; weights stored pre-transposed to [in, out])
# ---------------------------------------------------------------------------
def init_params(key, input_size=INPUT_SIZE, hidden_size=HIDDEN_SIZE,
                vector_size=VECTOR_SIZE):
    keys = jax.random.split(key, 12)

    def lin(kw, kb, fan_in, fan_out):
        bound = 1.0 / jnp.sqrt(fan_in)
        w = jax.random.uniform(kw, (fan_in, fan_out), jnp.float32, -bound, bound)
        b = jax.random.uniform(kb, (1, fan_out), jnp.float32, -bound, bound)
        return w, b

    w1, b1 = lin(keys[0], keys[1], input_size, hidden_size)
    w2, b2 = lin(keys[2], keys[3], hidden_size, hidden_size)
    wc, bc = lin(keys[4], keys[5], hidden_size, vector_size)
    wp, bp = lin(keys[6], keys[7], vector_size + input_size, 1)
    wd, bd = lin(keys[8], keys[9], vector_size + input_size, 1)
    wlc, blc = lin(keys[10], keys[11], vector_size, 1)

    return {
        "w1": w1, "b1": b1,
        "w2": w2, "b2": b2,
        "wc": wc, "bc": bc,
        # split of the concat([context, x])-Linear weights (cat order: ctx first)
        "wp_ctx": wp[:vector_size], "wp_x": wp[vector_size:], "bp": bp,
        "wd_ctx": wd[:vector_size], "wd_x": wd[vector_size:], "bd": bd,
        "wlc": wlc, "blc": blc,
    }


def reference_forward(x, params):
    """Pure-JAX f32 reference mirroring the PyTorch module exactly."""
    def leaky(v):
        return jnp.where(v > 0, v, NEG_SLOPE * v)
    h1 = leaky(x @ params["w1"] + params["b1"])
    h2 = leaky(h1 @ params["w2"] + params["b2"])
    ctx = h2 @ params["wc"] + params["bc"]
    cat = jnp.concatenate([ctx, x], axis=1)
    wp = jnp.concatenate([params["wp_ctx"], params["wp_x"]], axis=0)
    wd = jnp.concatenate([params["wd_ctx"], params["wd_x"]], axis=0)
    yp = jax.nn.sigmoid(cat @ wp + params["bp"])
    yd = jax.nn.sigmoid(cat @ wd + params["bd"])
    yc = jax.nn.sigmoid(ctx @ params["wlc"] + params["blc"])
    return yp, yd, yc


if __name__ == "__main__":
    key = jax.random.PRNGKey(0)
    k_params, k_x, k_x2 = jax.random.split(key, 3)

    params = init_params(k_params)
    # Weight prep is hoisted out of the jitted forward (one-time, at load).
    kp_f32 = prepare_kernel_params(params, compute_dtype=jnp.float32)
    kp_bf16 = prepare_kernel_params(params, compute_dtype=jnp.bfloat16)

    # --- small batch (single grid step) -----------------------------------
    B = 64
    x = jax.random.normal(k_x, (B, INPUT_SIZE), dtype=jnp.float32)
    ref_pred, ref_det, ref_ctx = reference_forward(x, params)

    yp32, yd32, yc32 = mlp_lr_context_forward(x, kp_f32)
    jax.block_until_ready((yp32, yd32, yc32))
    assert yp32.shape == (B, 1) and yd32.shape == (B, 1) and yc32.shape == (B, 1)
    assert jnp.allclose(yp32, ref_pred, atol=1e-4), "y_prediction mismatch (f32)"
    assert jnp.allclose(yd32, ref_det, atol=1e-4), "y_detection mismatch (f32)"
    assert jnp.allclose(yc32, ref_ctx, atol=1e-4), "y_context_prediction mismatch (f32)"

    yp, yd, yc = mlp_lr_context_forward(x, kp_bf16)
    jax.block_until_ready((yp, yd, yc))
    assert jnp.allclose(yp, ref_pred, atol=2e-2), "y_prediction mismatch (bf16)"
    assert jnp.allclose(yd, ref_det, atol=2e-2), "y_detection mismatch (bf16)"
    assert jnp.allclose(yc, ref_ctx, atol=2e-2), "y_context_prediction mismatch (bf16)"

    # --- ragged batch exercising 2 grid steps + tail padding ---------------
    B2 = 200
    x2 = jax.random.normal(k_x2, (B2, INPUT_SIZE), dtype=jnp.float32)
    r2p, r2d, r2c = reference_forward(x2, params)
    q2p, q2d, q2c = mlp_lr_context_forward(x2, kp_bf16)
    jax.block_until_ready((q2p, q2d, q2c))
    assert jnp.allclose(q2p, r2p, atol=2e-2), "ragged y_prediction mismatch"
    assert jnp.allclose(q2d, r2d, atol=2e-2), "ragged y_detection mismatch"
    assert jnp.allclose(q2c, r2c, atol=2e-2), "ragged y_context_prediction mismatch"

    print("KERNEL_OK")
</pallas_src>

<mosaic_0001>
module attributes {stable_mosaic.version = 11 : i64} {
  func.func @_mlp_kernel(%arg0: i32, %arg1: memref<11x128xf32, #tpu.memory_space<vmem>>, %arg2: memref<136x11xf32, #tpu.memory_space<vmem>>, %arg3: memref<128x1xf32, #tpu.memory_space<vmem>>, %arg4: memref<128x128xf32, #tpu.memory_space<vmem>>, %arg5: memref<128x1xf32, #tpu.memory_space<vmem>>, %arg6: memref<3x128xf32, #tpu.memory_space<vmem>>, %arg7: memref<3x1xf32, #tpu.memory_space<vmem>>, %arg8: memref<3x128xf32, #tpu.memory_space<vmem>>) attributes {dimension_semantics = [#tpu.dimension_semantics<parallel>], iteration_bounds = array<i64: 1>, scalar_prefetch = 0 : i64, scratch_operands = 0 : i64, tpu.core_type = #tpu.core_type<tc>, window_params = [{transform_indices = @transform_0, window_bounds = array<i64: 11, 128>}, {pipeline_mode = #tpu.pipeline_mode<synchronous>, transform_indices = @transform_1, window_bounds = array<i64: 136, 11>}, {pipeline_mode = #tpu.pipeline_mode<synchronous>, transform_indices = @transform_2, window_bounds = array<i64: 128, 1>}, {pipeline_mode = #tpu.pipeline_mode<synchronous>, transform_indices = @transform_3, window_bounds = array<i64: 128, 128>}, {pipeline_mode = #tpu.pipeline_mode<synchronous>, transform_indices = @transform_4, window_bounds = array<i64: 128, 1>}, {pipeline_mode = #tpu.pipeline_mode<synchronous>, transform_indices = @transform_5, window_bounds = array<i64: 3, 128>}, {pipeline_mode = #tpu.pipeline_mode<synchronous>, transform_indices = @transform_6, window_bounds = array<i64: 3, 1>}, {transform_indices = @transform_7, window_bounds = array<i64: 3, 128>}]} {
    %c0 = arith.constant 0 : index
    %c0_0 = arith.constant 0 : index
    %0 = vector.load %arg1[%c0, %c0_0] : memref<11x128xf32, #tpu.memory_space<vmem>>, vector<11x128xf32>
    %c0_1 = arith.constant 0 : index
    %c0_2 = arith.constant 0 : index
    %1 = vector.load %arg2[%c0_1, %c0_2] : memref<136x11xf32, #tpu.memory_space<vmem>>, vector<136x11xf32>
    %cst = arith.constant dense<0.000000e+00> : vector<136x128xf32>
    %2 = tpu.matmul %1, %0, %cst {dimension_numbers = #tpu.dot_dimension_numbers<[1], [0], [0], [1], [0, 0, 1, 1], [], []>} : vector<136x11xf32>, vector<11x128xf32>, vector<136x128xf32> -> vector<136x128xf32>
    %3 = vector.extract_strided_slice %2 {offsets = [0, 0], sizes = [128, 128], strides = [1, 1]} : vector<136x128xf32> to vector<128x128xf32>
    %c0_3 = arith.constant 0 : index
    %c0_4 = arith.constant 0 : index
    %4 = vector.load %arg3[%c0_3, %c0_4] : memref<128x1xf32, #tpu.memory_space<vmem>>, vector<128x1xf32>
    %5 = vector.broadcast %4 : vector<128x1xf32> to vector<128x128xf32>
    %6 = arith.addf %3, %5 : vector<128x128xf32>
    %cst_5 = arith.constant 0.000000e+00 : f32
    %7 = vector.broadcast %cst_5 : f32 to vector<128x128xf32>
    %8 = arith.cmpf ogt, %6, %7 : vector<128x128xf32>
    %cst_6 = arith.constant 0.00999999977 : f32
    %9 = vector.broadcast %cst_6 : f32 to vector<128x128xf32>
    %10 = arith.mulf %9, %6 : vector<128x128xf32>
    %11 = arith.select %8, %6, %10 : vector<128x128xi1>, vector<128x128xf32>
    %c0_7 = arith.constant 0 : index
    %c0_8 = arith.constant 0 : index
    %12 = vector.load %arg4[%c0_7, %c0_8] : memref<128x128xf32, #tpu.memory_space<vmem>>, vector<128x128xf32>
    %cst_9 = arith.constant dense<0.000000e+00> : vector<128x128xf32>
    %13 = tpu.matmul %12, %11, %cst_9 {dimension_numbers = #tpu.dot_dimension_numbers<[1], [0], [0], [1], [0, 0, 1, 1], [], []>} : vector<128x128xf32>, vector<128x128xf32>, vector<128x128xf32> -> vector<128x128xf32>
    %c0_10 = arith.constant 0 : index
    %c0_11 = arith.constant 0 : index
    %14 = vector.load %arg5[%c0_10, %c0_11] : memref<128x1xf32, #tpu.memory_space<vmem>>, vector<128x1xf32>
    %15 = vector.broadcast %14 : vector<128x1xf32> to vector<128x128xf32>
    %16 = arith.addf %13, %15 : vector<128x128xf32>
    %cst_12 = arith.constant 0.000000e+00 : f32
    %17 = vector.broadcast %cst_12 : f32 to vector<128x128xf32>
    %18 = arith.cmpf ogt, %16, %17 : vector<128x128xf32>
    %cst_13 = arith.constant 0.00999999977 : f32
    %19 = vector.broadcast %cst_13 : f32 to vector<128x128xf32>
    %20 = arith.mulf %19, %16 : vector<128x128xf32>
    %21 = arith.select %18, %16, %20 : vector<128x128xi1>, vector<128x128xf32>
    %c0_14 = arith.constant 0 : index
    %c0_15 = arith.constant 0 : index
    %22 = vector.load %arg6[%c0_14, %c0_15] : memref<3x128xf32, #tpu.memory_space<vmem>>, vector<3x128xf32>
    %cst_16 = arith.constant dense<0.000000e+00> : vector<3x128xf32>
    %23 = tpu.matmul %22, %21, %cst_16 {dimension_numbers = #tpu.dot_dimension_numbers<[1], [0], [0], [1], [0, 0, 1, 1], [], []>} : vector<3x128xf32>, vector<128x128xf32>, vector<3x128xf32> -> vector<3x128xf32>
    %24 = vector.extract_strided_slice %2 {offsets = [128, 0], sizes = [3, 128], strides = [1, 1]} : vector<136x128xf32> to vector<3x128xf32>
    %25 = arith.addf %23, %24 : vector<3x128xf32>
    %c0_17 = arith.constant 0 : index
    %c0_18 = arith.constant 0 : index
    %26 = vector.load %arg7[%c0_17, %c0_18] : memref<3x1xf32, #tpu.memory_space<vmem>>, vector<3x1xf32>
    %27 = vector.broadcast %26 : vector<3x1xf32> to vector<3x128xf32>
    %28 = arith.addf %25, %27 : vector<3x128xf32>
    %29 = arith.negf %28 : vector<3x128xf32>
    %30 = math.exp %29 : vector<3x128xf32>
    %cst_19 = arith.constant 1.000000e+00 : f32
    %31 = vector.broadcast %cst_19 : f32 to vector<3x128xf32>
    %32 = arith.addf %31, %30 : vector<3x128xf32>
    %33 = arith.divf %31, %32 : vector<3x128xf32>
    %c0_20 = arith.constant 0 : index
    %c0_21 = arith.constant 0 : index
    %34 = vector.load %arg8[%c0_20, %c0_21] : memref<3x128xf32, #tpu.memory_space<vmem>>, vector<3x128xf32>
    tpu.vector_store %arg8[%c0_20, %c0_21], %33 {strides = array<i32>} : memref<3x128xf32, #tpu.memory_space<vmem>>, vector<3x128xf32>,
    return
  }
  func.func @transform_0(%arg0: i32) -> (i32, i32) {
    %c0_i32 = arith.constant 0 : i32
    %c0_i32_0 = arith.constant 0 : i32
    return %c0_i32, %arg0 : i32, i32
  }
  func.func @transform_1(%arg0: i32) -> (i32, i32) {
    %c0_i32 = arith.constant 0 : i32
    %c0_i32_0 = arith.constant 0 : i32
    %c0_i32_1 = arith.constant 0 : i32
    return %c0_i32, %c0_i32_0 : i32, i32
  }
  func.func @transform_2(%arg0: i32) -> (i32, i32) {
    %c0_i32 = arith.constant 0 : i32
    %c0_i32_0 = arith.constant 0 : i32
    %c0_i32_1 = arith.constant 0 : i32
    return %c0_i32, %c0_i32_0 : i32, i32
  }
  func.func @transform_3(%arg0: i32) -> (i32, i32) {
    %c0_i32 = arith.constant 0 : i32
    %c0_i32_0 = arith.constant 0 : i32
    %c0_i32_1 = arith.constant 0 : i32
    return %c0_i32, %c0_i32_0 : i32, i32
  }
  func.func @transform_4(%arg0: i32) -> (i32, i32) {
    %c0_i32 = arith.constant 0 : i32
    %c0_i32_0 = arith.constant 0 : i32
    %c0_i32_1 = arith.constant 0 : i32
    return %c0_i32, %c0_i32_0 : i32, i32
  }
  func.func @transform_5(%arg0: i32) -> (i32, i32) {
    %c0_i32 = arith.constant 0 : i32
    %c0_i32_0 = arith.constant 0 : i32
    %c0_i32_1 = arith.constant 0 : i32
    return %c0_i32, %c0_i32_0 : i32, i32
  }
  func.func @transform_6(%arg0: i32) -> (i32, i32) {
    %c0_i32 = arith.constant 0 : i32
    %c0_i32_0 = arith.constant 0 : i32
    %c0_i32_1 = arith.constant 0 : i32
    return %c0_i32, %c0_i32_0 : i32, i32
  }
  func.func @transform_7(%arg0: i32) -> (i32, i32) {
    %c0_i32 = arith.constant 0 : i32
    %c0_i32_0 = arith.constant 0 : i32
    return %c0_i32, %arg0 : i32, i32
  }
}

</mosaic_0001>

<bundles_post_ra>
// kernel: mlp_lr_context_forward.1
= control target key start
LH: loop header
LB: loop body
LE: loop exit
PB: predicated region body
PF: predicated region fallthrough
CT: control target
= control target key end

     0   :  { %vm97_vm0 = vcmask 1042432   ;;  %v1109_v0 = vmov 0.0|0.0   ;;  %vm1110_vm1 = vmmov 1   ;;  %vm1111_vm3 = vmmov 0   ;;  %s1426_s0 = inlined_call_operand.vmem [shape: f32[11,128], index: 0, kind: input, shape index: {}]   ;;  %s1427_s1 = inlined_call_operand.vmem [shape: f32[136,11], index: 1, kind: input, shape index: {}]   ;;  %s1428_s2 = inlined_call_operand.vmem [shape: f32[128,1], index: 2, kind: input, shape index: {}]   ;;  %s1429_s4 = inlined_call_operand.vmem [shape: f32[128,1], index: 4, kind: input, shape index: {}]   ;;  %s1430_s6 = inlined_call_operand.vmem [shape: f32[3,1], index: 6, kind: input, shape index: {}]   ;;  %s1431_s3 = inlined_call_operand.vmem [shape: f32[128,128], index: 3, kind: input, shape index: {}]   ;;  %s1432_s5 = inlined_call_operand.vmem [shape: f32[3,128], index: 5, kind: input, shape index: {}]   ;;  %s1433_s7 = inlined_call_operand.vmem [shape: f32[3,128], index: 7, kind: output, shape index: {}]  }
   0x1   :  { %1038 = vmatprep.subr.bf16.mxu0 %v1109_v0  ;;  %v26_v1 = vld [vmem:[%s1426_s0] sm:$0xff]  ;;  %v27_v2 = vld [vmem:[%s1426_s0 + $0x8] sm:$0x7]  ;;  %vm1040_vm2 = vmpackc.low %vm97_vm0, %vm1110_vm1  ;;  %v1112_v4 = vmov 0.0   ;;  %v1113_v5 = vmov 0   ;;  %vm45_vm4 = vcmask 89088  }
   0x2   :  { %v1039_v3 = vpack.c.bf16 %v27_v2, %v26_v1  ;;  %896 = vmatprep.mubr.msk.f32.mxu0 %vm1111_vm3, %v1112_v4  ;;  %1103 = vset.pattern.permute.xlu0 %v1113_v5  ;;  %v28_v6 = vld [vmem:[%s1427_s1] sm:$0xff]  ;;  %v253_v8 = vld [vmem:[%s1428_s2 + $0x10] sm:$0xff]  ;;  %v29_v9 = vld [vmem:[%s1427_s1 + $0x8] sm:$0xff] }
   0x3   :  { %1104 = vset.pattern.permute.xlu1 %v1113_v5  ;;  %v251_v7 = vld [vmem:[%s1428_s2] sm:$0xff]  ;;  %v252_v10 = vld [vmem:[%s1428_s2 + $0x8] sm:$0xff]  ;;  %v254_v11 = vld [vmem:[%s1428_s2 + $0x18] sm:$0xff] }
   0x4   :  { %1041 = vmatpush3.bf16.msk.msra.mxu0 %vm1040_vm2, %v1039_v3  ;;  %269 = vperm.xlu0 %1103, %v251_v7   ;;  %v30_v12 = vld [vmem:[%s1427_s1 + $0x10] sm:$0xff]  ;;  %v255_v13 = vld [vmem:[%s1428_s2 + $0x20] sm:$0xff]  ;;  %v256_v14 = vld [vmem:[%s1428_s2 + $0x28] sm:$0xff] }
   0x5   :  { %279 = vperm.xlu1 %1104, %v253_v8   ;;  %v31_v15 = vld [vmem:[%s1427_s1 + $0x18] sm:$0xff]  ;;  %v257_v16 = vld [vmem:[%s1428_s2 + $0x30] sm:$0xff]  ;;  %v32_v18 = vld [vmem:[%s1427_s1 + $0x20] sm:$0xff] }
   0x6   :  { %v258_v17 = vld [vmem:[%s1428_s2 + $0x38] sm:$0xff]  ;;  %v259_v19 = vld [vmem:[%s1428_s2 + $0x40] sm:$0xff]  ;;  %v260_v20 = vld [vmem:[%s1428_s2 + $0x48] sm:$0xff] }
   0x7   :  { %897 = vmatmul.mubr.msk.f32.vlgmr.msra.gmra.mrb[0].mxu0 %vm45_vm4, %v28_v6  ;;  %v33_v21 = vld [vmem:[%s1427_s1 + $0x28] sm:$0xff]  ;;  %v261_v22 = vld [vmem:[%s1428_s2 + $0x50] sm:$0xff]  ;;  %v262_v23 = vld [vmem:[%s1428_s2 + $0x58] sm:$0xff] }
   0x8   :  { %899 = vmatprep.mubr.msk.f32.mxu0 %vm1111_vm3, %v1112_v4  ;;  %274 = vperm.xlu0 %1103, %v252_v10   ;;  %v34_v24 = vld [vmem:[%s1427_s1 + $0x30] sm:$0xff]  ;;  %v263_v25 = vld [vmem:[%s1428_s2 + $0x60] sm:$0xff]  ;;  %v264_v26 = vld [vmem:[%s1428_s2 + $0x68] sm:$0xff] }
   0x9   :  { %284 = vperm.xlu1 %1104, %v254_v11   ;;  %v35_v27 = vld [vmem:[%s1427_s1 + $0x38] sm:$0xff]  ;;  %v265_v28 = vld [vmem:[%s1428_s2 + $0x70] sm:$0xff]  ;;  %v36_v30 = vld [vmem:[%s1427_s1 + $0x40] sm:$0xff] }
   0xa   :  { %v266_v29 = vld [vmem:[%s1428_s2 + $0x78] sm:$0xff]  ;;  %v427_v31 = vld [vmem:[%s1429_s4] sm:$0xff]  ;;  %v428_v32 = vld [vmem:[%s1429_s4 + $0x8] sm:$0xff] }
   0xb   :  { %900 = vmatmul.mubr.msk.f32.gmra.mrb[2].mxu0 %vm45_vm4, %v29_v9  ;;  %v37_v33 = vld [vmem:[%s1427_s1 + $0x48] sm:$0xff]  ;;  %v429_v34 = vld [vmem:[%s1429_s4 + $0x10] sm:$0xff]  ;;  %v430_v35 = vld [vmem:[%s1429_s4 + $0x18] sm:$0xff] }
   0xc   :  { %902 = vmatprep.mubr.msk.f32.mxu0 %vm1111_vm3, %v1112_v4  ;;  %289 = vperm.xlu0 %1103, %v255_v13   ;;  %v38_v36 = vld [vmem:[%s1427_s1 + $0x50] sm:$0xff]  ;;  %v431_v37 = vld [vmem:[%s1429_s4 + $0x20] sm:$0xff]  ;;  %v432_v38 = vld [vmem:[%s1429_s4 + $0x28] sm:$0xff] }
   0xd   :  { %294 = vperm.xlu1 %1104, %v256_v14   ;;  %v39_v39 = vld [vmem:[%s1427_s1 + $0x58] sm:$0xff]  ;;  %v433_v40 = vld [vmem:[%s1429_s4 + $0x30] sm:$0xff]  ;;  %v40_v42 = vld [vmem:[%s1427_s1 + $0x60] sm:$0xff] }
   0xe   :  { %v434_v41 = vld [vmem:[%s1429_s4 + $0x38] sm:$0xff]  ;;  %v435_v43 = vld [vmem:[%s1429_s4 + $0x40] sm:$0xff]  ;;  %v436_v44 = vld [vmem:[%s1429_s4 + $0x48] sm:$0xff] }
   0xf   :  { %903 = vmatmul.mubr.msk.f32.gmra.mrb[4].mxu0 %vm45_vm4, %v30_v12  ;;  %v41_v45 = vld [vmem:[%s1427_s1 + $0x68] sm:$0xff]  ;;  %v437_v46 = vld [vmem:[%s1429_s4 + $0x50] sm:$0xff]  ;;  %v438_v47 = vld [vmem:[%s1429_s4 + $0x58] sm:$0xff] }
  0x10   :  { %905 = vmatprep.mubr.msk.f32.mxu0 %vm1111_vm3, %v1112_v4  ;;  %299 = vperm.xlu0 %1103, %v257_v16   ;;  %v42_v48 = vld [vmem:[%s1427_s1 + $0x70] sm:$0xff]  ;;  %v439_v49 = vld [vmem:[%s1429_s4 + $0x60] sm:$0xff]  ;;  %v440_v50 = vld [vmem:[%s1429_s4 + $0x68] sm:$0xff] }
  0x11   :  { %304 = vperm.xlu1 %1104, %v258_v17   ;;  %v43_v51 = vld [vmem:[%s1427_s1 + $0x78] sm:$0xff]  ;;  %v441_v52 = vld [vmem:[%s1429_s4 + $0x70] sm:$0xff]  ;;  %v787_v54 = vld [vmem:[%s1430_s6] sm:$0x7] }
  0x12   :  { %v442_v53 = vld [vmem:[%s1429_s4 + $0x78] sm:$0xff]  ;;  %v411_v55 = vld [vmem:[%s1431_s3] sm:$0xff] }
  0x13   :  { %906 = vmatmul.mubr.msk.f32.gmra.mrb[6].mxu0 %vm45_vm4, %v31_v15  ;;  %979 = vmatprep.mubr.f32.mxu1 %v411_v55 }
  0x14   :  { %908 = vmatprep.mubr.msk.f32.mxu0 %vm1111_vm3, %v1112_v4  ;;  %309 = vperm.xlu0 %1103, %v259_v19  }
  0x15   :  { %314 = vperm.xlu1 %1104, %v260_v20  }
  0x17   :  { %909 = vmatmul.mubr.msk.f32.gmra.mrb[8].mxu0 %vm45_vm4, %v32_v18 }
  0x18   :  { %911 = vmatprep.mubr.msk.f32.mxu0 %vm1111_vm3, %v1112_v4  ;;  %319 = vperm.xlu0 %1103, %v261_v22  }
  0x19   :  { %324 = vperm.xlu1 %1104, %v262_v23  }
  0x1b   :  { %912 = vmatmul.mubr.msk.f32.gmra.mrb[10].mxu0 %vm45_vm4, %v33_v21 }
  0x1c   :  { %914 = vmatprep.mubr.msk.f32.mxu0 %vm1111_vm3, %v1112_v4  ;;  %329 = vperm.xlu0 %1103, %v263_v25  }
  0x1d   :  { %334 = vperm.xlu1 %1104, %v264_v26  }
  0x1f   :  { %915 = vmatmul.mubr.msk.f32.gmra.mrb[12].mxu0 %vm45_vm4, %v34_v24 }
  0x20   :  { %917 = vmatprep.mubr.msk.f32.mxu0 %vm1111_vm3, %v1112_v4  ;;  %339 = vperm.xlu0 %1103, %v265_v28  }
  0x21   :  { %344 = vperm.xlu1 %1104, %v266_v29  }
  0x23   :  { %918 = vmatmul.mubr.msk.f32.gmra.mrb[14].mxu0 %vm45_vm4, %v35_v27 }
  0x24   :  { %920 = vmatprep.mubr.msk.f32.mxu0 %vm1111_vm3, %v1112_v4  ;;  %445 = vperm.xlu0 %1103, %v427_v31  }
  0x25   :  { %450 = vperm.xlu1 %1104, %v428_v32  }
  0x27   :  { %921 = vmatmul.mubr.msk.f32.gmra.mrb[16].mxu0 %vm45_vm4, %v36_v30 }
  0x28   :  { %923 = vmatprep.mubr.msk.f32.mxu0 %vm1111_vm3, %v1112_v4  ;;  %455 = vperm.xlu0 %1103, %v429_v34  }
  0x29   :  { %460 = vperm.xlu1 %1104, %v430_v35  }
  0x2b   :  { %924 = vmatmul.mubr.msk.f32.gmra.mrb[18].mxu0 %vm45_vm4, %v37_v33 }
  0x2c   :  { %926 = vmatprep.mubr.msk.f32.mxu0 %vm1111_vm3, %v1112_v4  ;;  %465 = vperm.xlu0 %1103, %v431_v37  }
  0x2d   :  { %470 = vperm.xlu1 %1104, %v432_v38  }
  0x2f   :  { %927 = vmatmul.mubr.msk.f32.gmra.mrb[20].mxu0 %vm45_vm4, %v38_v36 }
  0x30   :  { %929 = vmatprep.mubr.msk.f32.mxu0 %vm1111_vm3, %v1112_v4  ;;  %475 = vperm.xlu0 %1103, %v433_v40  }
  0x31   :  { %480 = vperm.xlu1 %1104, %v434_v41  }
  0x33   :  { %930 = vmatmul.mubr.msk.f32.gmra.mrb[22].mxu0 %vm45_vm4, %v39_v39 }
  0x34   :  { %932 = vmatprep.mubr.msk.f32.mxu0 %vm1111_vm3, %v1112_v4  ;;  %485 = vperm.xlu0 %1103, %v435_v43  }
  0x35   :  { %490 = vperm.xlu1 %1104, %v436_v44  }
  0x37   :  { %933 = vmatmul.mubr.msk.f32.gmra.mrb[24].mxu0 %vm45_vm4, %v40_v42 }
  0x38   :  { %935 = vmatprep.mubr.msk.f32.mxu0 %vm1111_vm3, %v1112_v4  ;;  %495 = vperm.xlu0 %1103, %v437_v46  }
  0x39   :  { %500 = vperm.xlu1 %1104, %v438_v47  }
  0x3b   :  { %936 = vmatmul.mubr.msk.f32.gmra.mrb[26].mxu0 %vm45_vm4, %v41_v45 }
  0x3c   :  { %938 = vmatprep.mubr.msk.f32.mxu0 %vm1111_vm3, %v1112_v4  ;;  %505 = vperm.xlu0 %1103, %v439_v49  }
  0x3d   :  { %510 = vperm.xlu1 %1104, %v440_v50  }
  0x3f   :  { %939 = vmatmul.mubr.msk.f32.gmra.mrb[28].mxu0 %vm45_vm4, %v42_v48 }
  0x40   :  { %941 = vmatprep.mubr.msk.f32.mxu0 %vm1111_vm3, %v1112_v4  ;;  %515 = vperm.xlu0 %1103, %v441_v52  }
  0x41   :  { %520 = vperm.xlu1 %1104, %v442_v53  }
  0x43   :  { %942 = vmatmul.mubr.msk.f32.gmra.mrb[30].mxu0 %vm45_vm4, %v43_v51 }
  0x44   :  { %944 = vmatprep.mubr.msk.f32.mxu0 %vm1111_vm3, %v1112_v4  ;;  %790 = vperm.xlu0 %1103, %v787_v54  }
  0x83   :  { %v270_v56 = vpop.permute.xlu0 %269 }
  0x84   :  { %v280_v2 = vpop.permute.xlu1 %279 }
  0x87   :  { %v275_v60 = vpop.permute.xlu0 %274 }
  0x88   :  { %v285_v11 = vpop.permute.xlu1 %284 }
  0x8b   :  { %v290_v17 = vpop.permute.xlu0 %289 }
  0x8c   :  { %v295_v24 = vpop.permute.xlu1 %294 }
  0x8f   :  { %v300_v30 = vpop.permute.xlu0 %299 }
  0x90   :  { %v305_v37 = vpop.permute.xlu1 %304 }
  0x93   :  { %v310_v43 = vpop.permute.xlu0 %309 }
  0x94   :  { %v315_v50 = vpop.permute.xlu1 %314 }
  0xda   :  { %v167_v57 = vpop.f32.mrb[0].mxu0 }
  0xdb   :  { %v347_v58 = vadd.f32 %v270_v56, %v167_v57  ;;  %v898_v59 = vpop.f32.mrb[1].mxu0  ;;  %v320_v56 = vpop.permute.xlu0 %319 }
  0xdd   :  { %v379_v62 = vmul.f32 0.01, %v347_v58  ;;  %vm363_vm5 = vcmp.gt.f32.partialorder %v347_v58, 0.0 }
  0xde   :  { %v172_v61 = vpop.f32.mrb[2].mxu0 }
  0xdf   :  { %v348_v63 = vadd.f32 %v275_v60, %v172_v61  ;;  %v901_v1 = vpop.f32.mrb[3].mxu0  ;;  %v395_v8 = vsel %vm363_vm5, %v347_v58, %v379_v62 }
  0xe1   :  { %v380_v3 = vmul.f32 0.01, %v348_v63  ;;  %vm364_vm6 = vcmp.gt.f32.partialorder %v348_v63, 0.0 }
  0xe2   :  { %v177_v5 = vpop.f32.mrb[4].mxu0 }
  0xe3   :  { %v349_v6 = vadd.f32 %v280_v2, %v177_v5  ;;  %v904_v7 = vpop.f32.mrb[5].mxu0  ;;  %v396_v9 = vsel %vm364_vm6, %v348_v63, %v380_v3  ;;  %v325_v63 = vpop.permute.xlu1 %324 }
  0xe4   :  { %v1042_v10 = vpack.c.bf16 %v396_v9, %v395_v8  ;;  %v330_v7 = vpop.permute.xlu0 %329 }
  0xe5   :  { %v381_v13 = vmul.f32 0.01, %v349_v6  ;;  %vm365_vm7 = vcmp.gt.f32.partialorder %v349_v6, 0.0 }
  0xe6   :  { %v182_v12 = vpop.f32.mrb[6].mxu0  ;;  %1043 = vmatprep.subr.bf16.mxu1 %v1042_v10 }
  0xe7   :  { %v350_v14 = vadd.f32 %v285_v11, %v182_v12  ;;  %v907_v15 = vpop.f32.mrb[7].mxu0  ;;  %1045 = vmatpush3.bf16.msra.mxu1 %v1042_v10  ;;  %v397_v21 = vsel %vm365_vm7, %v349_v6, %v381_v13 }
  0xe9   :  { %vm366_vm8 = vcmp.gt.f32.partialorder %v350_v14, 0.0  ;;  %v382_v16 = vmul.f32 0.01, %v350_v14 }
  0xea   :  { %v187_v18 = vpop.f32.mrb[8].mxu0 }
  0xeb   :  { %v351_v19 = vadd.f32 %v290_v17, %v187_v18  ;;  %v910_v20 = vpop.f32.mrb[9].mxu0  ;;  %v398_v22 = vsel %vm366_vm8, %v350_v14, %v382_v16  ;;  %v335_v14 = vpop.permute.xlu1 %334 }
  0xec   :  { %v1046_v23 = vpack.c.bf16 %v398_v22, %v397_v21  ;;  %v340_v20 = vpop.permute.xlu0 %339 }
  0xed   :  { %v383_v26 = vmul.f32 0.01, %v351_v19  ;;  %vm367_vm9 = vcmp.gt.f32.partialorder %v351_v19, 0.0 }
  0xee   :  { %v192_v25 = vpop.f32.mrb[10].mxu0  ;;  %1047 = vmatprep.subr.bf16.mxu1 %v1046_v23 }
  0xef   :  { %v352_v27 = vadd.f32 %v295_v24, %v192_v25  ;;  %v913_v28 = vpop.f32.mrb[11].mxu0  ;;  %1049 = vmatpush3.bf16.msra.mxu1 %v1046_v23  ;;  %v399_v34 = vsel %vm367_vm9, %v351_v19, %v383_v26 }
  0xf1   :  { %vm368_vm10 = vcmp.gt.f32.partialorder %v352_v27, 0.0  ;;  %v384_v29 = vmul.f32 0.01, %v352_v27 }
  0xf2   :  { %v197_v31 = vpop.f32.mrb[12].mxu0 }
  0xf3   :  { %v353_v32 = vadd.f32 %v300_v30, %v197_v31  ;;  %v916_v33 = vpop.f32.mrb[13].mxu0  ;;  %v400_v35 = vsel %vm368_vm10, %v352_v27, %v384_v29  ;;  %v345_v27 = vpop.permute.xlu1 %344 }
  0xf4   :  { %v1050_v36 = vpack.c.bf16 %v400_v35, %v399_v34 }
  0xf5   :  { %v385_v39 = vmul.f32 0.01, %v353_v32  ;;  %vm369_vm11 = vcmp.gt.f32.partialorder %v353_v32, 0.0 }
  0xf6   :  { %v202_v38 = vpop.f32.mrb[14].mxu0  ;;  %1051 = vmatprep.subr.bf16.mxu1 %v1050_v36 }
  0xf7   :  { %v354_v40 = vadd.f32 %v305_v37, %v202_v38  ;;  %v919_v41 = vpop.f32.mrb[15].mxu0  ;;  %1053 = vmatpush3.bf16.msra.mxu1 %v1050_v36  ;;  %v401_v47 = vsel %vm369_vm11, %v353_v32, %v385_v39  ;;  %v412_v36 = vld [vmem:[%s1431_s3 + $0x8] sm:$0xff]  ;;  %v413_v37 = vld [vmem:[%s1431_s3 + $0x10] sm:$0xff]  ;;  %v414_v38 = vld [vmem:[%s1431_s3 + $0x18] sm:$0xff] }
  0xf8   :  { %v415_v39 = vld [vmem:[%s1431_s3 + $0x20] sm:$0xff]  ;;  %v417_v41 = vld [vmem:[%s1431_s3 + $0x30] sm:$0xff] }
  0xf9   :  { %vm370_vm12 = vcmp.gt.f32.partialorder %v354_v40, 0.0  ;;  %v386_v42 = vmul.f32 0.01, %v354_v40 }
  0xfa   :  { %v207_v44 = vpop.f32.mrb[16].mxu0 }
  0xfb   :  { %v355_v45 = vadd.f32 %v310_v43, %v207_v44  ;;  %v922_v46 = vpop.f32.mrb[17].mxu0  ;;  %v402_v48 = vsel %vm370_vm12, %v354_v40, %v386_v42  ;;  %v416_v40 = vld [vmem:[%s1431_s3 + $0x28] sm:$0xff]  ;;  %v418_v42 = vld [vmem:[%s1431_s3 + $0x38] sm:$0xff]  ;;  %v419_v43 = vld [vmem:[%s1431_s3 + $0x40] sm:$0xff] }
  0xfc   :  { %v1054_v49 = vpack.c.bf16 %v402_v48, %v401_v47  ;;  %v420_v44 = vld [vmem:[%s1431_s3 + $0x48] sm:$0xff]  ;;  %v422_v46 = vld [vmem:[%s1431_s3 + $0x58] sm:$0xff]  ;;  %v423_v47 = vld [vmem:[%s1431_s3 + $0x60] sm:$0xff] }
  0xfd   :  { %v387_v52 = vmul.f32 0.01, %v355_v45  ;;  %vm371_vm13 = vcmp.gt.f32.partialorder %v355_v45, 0.0  ;;  %v424_v48 = vld [vmem:[%s1431_s3 + $0x68] sm:$0xff] }
  0xfe   :  { %v212_v51 = vpop.f32.mrb[18].mxu0  ;;  %1055 = vmatprep.subr.bf16.mxu1 %v1054_v49 }
  0xff   :  { %v356_v53 = vadd.f32 %v315_v50, %v212_v51  ;;  %v925_v54 = vpop.f32.mrb[19].mxu0  ;;  %1057 = vmatpush3.bf16.msra.mxu1 %v1054_v49  ;;  %v403_v60 = vsel %vm371_vm13, %v355_v45, %v387_v52  ;;  %v421_v45 = vld [vmem:[%s1431_s3 + $0x50] sm:$0xff]  ;;  %v426_v50 = vld [vmem:[%s1431_s3 + $0x78] sm:$0xff]  ;;  %v44_v51 = vld [vmem:[%s1427_s1 + $0x80] sm:$0xff]  ;;  %v451_v52 = vpop.permute.xlu1 %450 }
 0x100   :  { %v425_v49 = vld [vmem:[%s1431_s3 + $0x70] sm:$0xff]  ;;  %945 = vmatmul.mubr.msk.f32.gmra.mrb[32].mxu0 %vm45_vm4, %v44_v51 }
 0x101   :  { %vm372_vm14 = vcmp.gt.f32.partialorder %v356_v53, 0.0  ;;  %v388_v55 = vmul.f32 0.01, %v356_v53 }
 0x102   :  { %v217_v57 = vpop.f32.mrb[20].mxu0 }
 0x103   :  { %v357_v58 = vadd.f32 %v320_v56, %v217_v57  ;;  %v928_v59 = vpop.f32.mrb[21].mxu0  ;;  %v404_v61 = vsel %vm372_vm14, %v356_v53, %v388_v55  ;;  %v446_v53 = vpop.permute.xlu0 %445 }
 0x104   :  { %v1058_v62 = vpack.c.bf16 %v404_v61, %v403_v60  ;;  %v461_v54 = vpop.permute.xlu1 %460 }
 0x105   :  { %v389_v2 = vmul.f32 0.01, %v357_v58  ;;  %vm373_vm15 = vcmp.gt.f32.partialorder %v357_v58, 0.0 }
 0x106   :  { %v222_v1 = vpop.f32.mrb[22].mxu0  ;;  %1059 = vmatprep.subr.bf16.mxu1 %v1058_v62 }
 0x107   :  { %v358_v3 = vadd.f32 %v325_v63, %v222_v1  ;;  %v931_v5 = vpop.f32.mrb[23].mxu0  ;;  %1061 = vmatpush3.bf16.msra.mxu1 %v1058_v62  ;;  %v405_v11 = vsel %vm373_vm15, %v357_v58, %v389_v2  ;;  %v456_v55 = vpop.permute.xlu0 %455 }
 0x108   :  { %v471_v56 = vpop.permute.xlu1 %470 }
 0x109   :  { %vm374_vm0 = vcmp.gt.f32.partialorder %v358_v3, 0.0  ;;  %v390_v6 = vmul.f32 0.01, %v358_v3 }
 0x10a   :  { %v227_v8 = vpop.f32.mrb[24].mxu0 }
 0x10b   :  { %v359_v9 = vadd.f32 %v330_v7, %v227_v8  ;;  %v934_v10 = vpop.f32.mrb[25].mxu0  ;;  %v406_v12 = vsel %vm374_vm0, %v358_v3, %v390_v6  ;;  %v466_v57 = vpop.permute.xlu0 %465 }
 0x10c   :  { %v1062_v13 = vpack.c.bf16 %v406_v12, %v405_v11  ;;  %v481_v63 = vpop.permute.xlu1 %480 }
 0x10d   :  { %v391_v16 = vmul.f32 0.01, %v359_v9  ;;  %vm375_vm1 = vcmp.gt.f32.partialorder %v359_v9, 0.0 }
 0x10e   :  { %v232_v15 = vpop.f32.mrb[26].mxu0  ;;  %1063 = vmatprep.subr.bf16.mxu1 %v1062_v13 }
 0x10f   :  { %v360_v17 = vadd.f32 %v335_v14, %v232_v15  ;;  %v937_v18 = vpop.f32.mrb[27].mxu0  ;;  %1065 = vmatpush3.bf16.msra.mxu1 %v1062_v13  ;;  %v407_v24 = vsel %vm375_vm1, %v359_v9, %v391_v16  ;;  %v476_v2 = vpop.permute.xlu0 %475 }
 0x110   :  { %v491_v16 = vpop.permute.xlu1 %490 }
 0x111   :  { %vm376_vm2 = vcmp.gt.f32.partialorder %v360_v17, 0.0  ;;  %v392_v19 = vmul.f32 0.01, %v360_v17 }
 0x112   :  { %v237_v21 = vpop.f32.mrb[28].mxu0 }
 0x113   :  { %v361_v22 = vadd.f32 %v340_v20, %v237_v21  ;;  %v940_v23 = vpop.f32.mrb[29].mxu0  ;;  %v408_v25 = vsel %vm376_vm2, %v360_v17, %v392_v19  ;;  %v486_v19 = vpop.permute.xlu0 %485 }
 0x114   :  { %v1066_v26 = vpack.c.bf16 %v408_v25, %v407_v24 }
 0x115   :  { %v393_v29 = vmul.f32 0.01, %v361_v22  ;;  %vm377_vm5 = vcmp.gt.f32.partialorder %v361_v22, 0.0 }
 0x116   :  { %v242_v28 = vpop.f32.mrb[30].mxu0  ;;  %1067 = vmatprep.subr.bf16.mxu1 %v1066_v26 }
 0x117   :  { %v362_v30 = vadd.f32 %v345_v27, %v242_v28  ;;  %v943_v31 = vpop.f32.mrb[31].mxu0  ;;  %1069 = vmatpush3.bf16.msra.mxu1 %v1066_v26  ;;  %v409_v33 = vsel %vm377_vm5, %v361_v22, %v393_v29 }
 0x118   :  { %v501_v31 = vpop.permute.xlu1 %500 }
 0x119   :  { %vm378_vm6 = vcmp.gt.f32.partialorder %v362_v30, 0.0  ;;  %v394_v32 = vmul.f32 0.01, %v362_v30 }
 0x11b   :  { %v410_v34 = vsel %vm378_vm6, %v362_v30, %v394_v32 }
 0x11c   :  { %v1070_v35 = vpack.c.bf16 %v410_v34, %v409_v33  ;;  %v496_v34 = vpop.permute.xlu0 %495 }
 0x11e   :  { %1071 = vmatprep.subr.bf16.mxu1 %v1070_v35 }
 0x11f   :  { %1073 = vmatpush3.bf16.msra.mxu1 %v1070_v35 }
 0x120   :  { %1074 = vmatprep.subr.bf16.mxu1 %v1109_v0 }
 0x122   :  { %980 = vmatmul.mubr.f32.vlgmr.msra.gmra.mrb[0].mxu1 %v412_v36 }
 0x123   :  { %982 = vmatprep.mubr.f32.mxu1 %v413_v37 }
 0x126   :  { %983 = vmatmul.mubr.f32.gmra.mrb[2].mxu1 %v414_v38 }
 0x127   :  { %985 = vmatprep.mubr.f32.mxu1 %v415_v39 }
 0x12a   :  { %986 = vmatmul.mubr.f32.gmra.mrb[4].mxu1 %v416_v40 }
 0x12b   :  { %988 = vmatprep.mubr.f32.mxu1 %v417_v41 }
 0x12e   :  { %989 = vmatmul.mubr.f32.gmra.mrb[6].mxu1 %v418_v42 }
 0x12f   :  { %991 = vmatprep.mubr.f32.mxu1 %v419_v43 }
 0x132   :  { %992 = vmatmul.mubr.f32.gmra.mrb[8].mxu1 %v420_v44 }
 0x133   :  { %994 = vmatprep.mubr.f32.mxu1 %v421_v45 }
 0x136   :  { %995 = vmatmul.mubr.f32.gmra.mrb[10].mxu1 %v422_v46 }
 0x137   :  { %997 = vmatprep.mubr.f32.mxu1 %v423_v47  ;;  %v511_v47 = vpop.permute.xlu1 %510 }
 0x13a   :  { %998 = vmatmul.mubr.f32.gmra.mrb[12].mxu1 %v424_v48 }
 0x13b   :  { %1000 = vmatprep.mubr.f32.mxu1 %v425_v49 }
 0x13e   :  { %1001 = vmatmul.mubr.f32.gmra.mrb[14].mxu1 %v426_v50  ;;  %v506_v50 = vpop.permute.xlu0 %505 }
 0x13f   :  { %1035 = vmatprep.mubr.msk.f32.mxu1 %vm1111_vm3, %v1112_v4 }
 0x1f5   :  { %v981_v58 = vpop.f32.mrb[0].mxu1 }
 0x1f6   :  { %v595_v59 = vadd.f32 %v981_v58, %v451_v52  ;;  %v589_v60 = vpop.f32.mrb[1].mxu1 }
 0x1f7   :  { %v590_v61 = vadd.f32 %v589_v60, %v446_v53 }
 0x1f8   :  { %vm669_vm7 = vcmp.gt.f32.partialorder %v595_v59, 0.0  ;;  %v685_v62 = vmul.f32 0.01, %v595_v59 }
 0x1f9   :  { %vm668_vm3 = vcmp.gt.f32.partialorder %v590_v61, 0.0  ;;  %v684_v4 = vmul.f32 0.01, %v590_v61  ;;  %v984_v1 = vpop.f32.mrb[2].mxu1 }
 0x1fa   :  { %v701_v3 = vsel %vm669_vm7, %v595_v59, %v685_v62  ;;  %v605_v5 = vadd.f32 %v984_v1, %v461_v54  ;;  %v599_v6 = vpop.f32.mrb[3].mxu1  ;;  %v521_v62 = vpop.permute.xlu1 %520 }
 0x1fb   :  { %v700_v7 = vsel %vm668_vm3, %v590_v61, %v684_v4  ;;  %v600_v8 = vadd.f32 %v599_v6, %v456_v55  ;;  %v516_v1 = vpop.permute.xlu0 %515 }
 0x1fc   :  { %v1075_v9 = vpack.c.bf16 %v701_v3, %v700_v7  ;;  %vm671_vm4 = vcmp.gt.f32.partialorder %v605_v5, 0.0  ;;  %v687_v10 = vmul.f32 0.01, %v605_v5 }
 0x1fd   :  { %vm670_vm8 = vcmp.gt.f32.partialorder %v600_v8, 0.0  ;;  %v686_v11 = vmul.f32 0.01, %v600_v8  ;;  %v987_v12 = vpop.f32.mrb[4].mxu1 }
 0x1fe   :  { %v703_v13 = vsel %vm671_vm4, %v605_v5, %v687_v10  ;;  %v615_v14 = vadd.f32 %v987_v12, %v471_v56  ;;  %v609_v15 = vpop.f32.mrb[5].mxu1  ;;  %1076 = vmatpush3.bf16.msra.mxu1 %v1075_v9 }
 0x1ff   :  { %v702_v17 = vsel %vm670_vm8, %v600_v8, %v686_v11  ;;  %v610_v18 = vadd.f32 %v609_v15, %v466_v57  ;;  %1077 = vmatprep.subr.bf16.mxu1 %v1109_v0  ;;  %v247_v15 = vpop.f32.mrb[32].mxu0 }
 0x200   :  { %v1078_v20 = vpack.c.bf16 %v703_v13, %v702_v17  ;;  %vm673_vm9 = vcmp.gt.f32.partialorder %v615_v14, 0.0  ;;  %v689_v21 = vmul.f32 0.01, %v615_v14 }
 0x201   :  { %vm672_vm10 = vcmp.gt.f32.partialorder %v610_v18, 0.0  ;;  %v688_v22 = vmul.f32 0.01, %v610_v18  ;;  %v990_v23 = vpop.f32.mrb[6].mxu1 }
 0x202   :  { %v705_v24 = vsel %vm673_vm9, %v615_v14, %v689_v21  ;;  %v625_v25 = vadd.f32 %v990_v23, %v481_v63  ;;  %v619_v26 = vpop.f32.mrb[7].mxu1  ;;  %1079 = vmatpush3.bf16.msra.mxu1 %v1078_v20  ;;  %v716_v14 = vld [vmem:[%s1432_s5] sm:$0x7]  ;;  %v791_v20 = vpop.permute.xlu0 %790 }
 0x203   :  { %v704_v27 = vsel %vm672_vm10, %v610_v18, %v688_v22  ;;  %v620_v28 = vadd.f32 %v619_v26, %v476_v2  ;;  %1080 = vmatprep.subr.bf16.mxu1 %v1109_v0 }
 0x204   :  { %v1081_v29 = vpack.c.bf16 %v705_v24, %v704_v27  ;;  %vm675_vm11 = vcmp.gt.f32.partialorder %v625_v25, 0.0  ;;  %v691_v30 = vmul.f32 0.01, %v625_v25 }
 0x205   :  { %vm674_vm12 = vcmp.gt.f32.partialorder %v620_v28, 0.0  ;;  %v690_v32 = vmul.f32 0.01, %v620_v28  ;;  %v993_v33 = vpop.f32.mrb[8].mxu1 }
 0x206   :  { %v707_v35 = vsel %vm675_vm11, %v625_v25, %v691_v30  ;;  %v635_v36 = vadd.f32 %v993_v33, %v491_v16  ;;  %v629_v37 = vpop.f32.mrb[9].mxu1  ;;  %1082 = vmatpush3.bf16.msra.mxu1 %v1081_v29  ;;  %v946_v16 = vpop.f32.mrb[33].mxu0 }
 0x207   :  { %v706_v38 = vsel %vm674_vm12, %v620_v28, %v690_v32  ;;  %v630_v39 = vadd.f32 %v629_v37, %v486_v19  ;;  %1083 = vmatprep.subr.bf16.mxu1 %v1109_v0 }
 0x208   :  { %v1084_v40 = vpack.c.bf16 %v707_v35, %v706_v38  ;;  %vm677_vm13 = vcmp.gt.f32.partialorder %v635_v36, 0.0  ;;  %v693_v41 = vmul.f32 0.01, %v635_v36 }
 0x209   :  { %vm676_vm14 = vcmp.gt.f32.partialorder %v630_v39, 0.0  ;;  %v692_v42 = vmul.f32 0.01, %v630_v39  ;;  %v996_v43 = vpop.f32.mrb[10].mxu1 }
 0x20a   :  { %v709_v44 = vsel %vm677_vm13, %v635_v36, %v693_v41  ;;  %v645_v45 = vadd.f32 %v996_v43, %v501_v31  ;;  %v639_v46 = vpop.f32.mrb[11].mxu1  ;;  %1085 = vmatpush3.bf16.msra.mxu1 %v1084_v40 }
 0x20b   :  { %v708_v48 = vsel %vm676_vm14, %v630_v39, %v692_v42  ;;  %v640_v49 = vadd.f32 %v639_v46, %v496_v34  ;;  %1086 = vmatprep.subr.bf16.mxu1 %v1109_v0 }
 0x20c   :  { %v1087_v51 = vpack.c.bf16 %v709_v44, %v708_v48  ;;  %vm679_vm15 = vcmp.gt.f32.partialorder %v645_v45, 0.0  ;;  %v695_v52 = vmul.f32 0.01, %v645_v45 }
 0x20d   :  { %vm678_vm0 = vcmp.gt.f32.partialorder %v640_v49, 0.0  ;;  %v694_v53 = vmul.f32 0.01, %v640_v49  ;;  %v999_v54 = vpop.f32.mrb[12].mxu1 }
 0x20e   :  { %v711_v55 = vsel %vm679_vm15, %v645_v45, %v695_v52  ;;  %v655_v56 = vadd.f32 %v999_v54, %v511_v47  ;;  %v649_v57 = vpop.f32.mrb[13].mxu1  ;;  %1088 = vmatpush3.bf16.msra.mxu1 %v1087_v51 }
 0x20f   :  { %v710_v58 = vsel %vm678_vm0, %v640_v49, %v694_v53  ;;  %v650_v59 = vadd.f32 %v649_v57, %v506_v50  ;;  %1089 = vmatprep.subr.bf16.mxu1 %v1109_v0 }
 0x210   :  { %v1090_v60 = vpack.c.bf16 %v711_v55, %v710_v58  ;;  %vm681_vm1 = vcmp.gt.f32.partialorder %v655_v56, 0.0  ;;  %v697_v61 = vmul.f32 0.01, %v655_v56 }
 0x211   :  { %vm680_vm2 = vcmp.gt.f32.partialorder %v650_v59, 0.0  ;;  %v696_v63 = vmul.f32 0.01, %v650_v59  ;;  %v1002_v4 = vpop.f32.mrb[14].mxu1 }
 0x212   :  { %v713_v2 = vsel %vm681_vm1, %v655_v56, %v697_v61  ;;  %v665_v3 = vadd.f32 %v1002_v4, %v521_v62  ;;  %v659_v5 = vpop.f32.mrb[15].mxu1  ;;  %1091 = vmatpush3.bf16.msra.mxu1 %v1090_v60 }
 0x213   :  { %v712_v6 = vsel %vm680_vm2, %v650_v59, %v696_v63  ;;  %v660_v7 = vadd.f32 %v659_v5, %v516_v1  ;;  %1092 = vmatprep.subr.bf16.mxu1 %v1109_v0 }
 0x214   :  { %v1093_v8 = vpack.c.bf16 %v713_v2, %v712_v6  ;;  %vm683_vm5 = vcmp.gt.f32.partialorder %v665_v3, 0.0  ;;  %v699_v9 = vmul.f32 0.01, %v665_v3 }
 0x215   :  { %vm682_vm6 = vcmp.gt.f32.partialorder %v660_v7, 0.0  ;;  %v698_v10 = vmul.f32 0.01, %v660_v7 }
 0x216   :  { %v715_v11 = vsel %vm683_vm5, %v665_v3, %v699_v9  ;;  %1094 = vmatpush3.bf16.msra.mxu1 %v1093_v8 }
 0x217   :  { %v714_v12 = vsel %vm682_vm6, %v660_v7, %v698_v10  ;;  %1095 = vmatprep.subr.bf16.mxu1 %v1109_v0 }
 0x218   :  { %v1096_v13 = vpack.c.bf16 %v715_v11, %v714_v12 }
 0x21a   :  { %1097 = vmatpush3.bf16.msra.mxu1 %v1096_v13 }
 0x21d   :  { %1036 = vmatmul.mubr.f32.vlgmr.msra.gmra.mrb[16].mxu1 %v716_v14 }
 0x2f0   :  { %v783_v17 = vpop.f32.mrb[16].mxu1 }
 0x2f1   :  { %v784_v18 = vadd.f32 %v783_v17, %v247_v15  ;;  %v1037_v19 = vpop.f32.mrb[17].mxu1 }
 0x2f3   :  { %v793_v21 = vadd.f32 %v791_v20, %v784_v18 }
 0x2f5   :  { %v823_v22 = vmul.f32 -1.442695, %v793_v21 }
 0x2f7   :  { %1105 = vpow2.f32 %v823_v22 }
 0x301   :  { %v1106_v23 = vpop.eup %1105 }
 0x302   :  { %v797_v24 = vadd.f32 1.0, %v1106_v23 }
 0x304   :  { %1107 = vrcp.f32 %v797_v24 }
 0x30e   :  { %v1108_v0 = vpop.eup %1107 }
 0x30f   :  { %800 = vst [vmem:[%s1433_s7] sm:$0x7] %v1108_v0 }

</bundles_post_ra>
